<compile_context>
chip_gen: v7x
topology: tpu7x:2x2x1
jax: 0.10.0
libtpu: 0.0.40
codegen_flags: <defaults>
</compile_context>

<pallas_src>
import functools

import jax
import jax.numpy as jnp
from jax.experimental import pallas as pl
from jax.experimental.pallas import tpu as pltpu

# Deterministic "parameters" of the transforms (ImageNet-style constants).
_MEAN = (0.485, 0.456, 0.406)
_STD = (0.229, 0.224, 0.225)


def _normalize_kernel(a_ref, b_ref, x_ref, o1_ref, o2_ref):
    """x_ref: (1, tile_rows, L) pixels of one channel-plane strip (0..255).

    a_ref / b_ref: (3,) SMEM per-channel scale / bias for transform2.
    Body is exactly: cast + 2 muls + 1 add (store-slot / write-BW bound).
    """
    c = pl.program_id(0)
    x = x_ref[...].astype(jnp.float32)
    # transform1: ToTensor() -> scale to [0, 1]
    o1_ref[...] = x * jnp.float32(1.0 / 255.0)
    # transform2: ToTensor() + Normalize(mean, std), folded to a single FMA:
    #   (x/255 - mean)/std == x * (1/(255*std)) + (-mean/std)
    # (reassociation differs from the literal reference by ~1e-6)
    o2_ref[...] = x * a_ref[c] + b_ref[c]


def _pick_lane_width(plane_elems):
    """Largest multiple-of-128 lane width that divides the plane size; if none
    divides, use 512 and zero-pad the plane (pad is done on uint8, sliced off
    the f32 output afterwards)."""
    for cand in (1024, 768, 512, 384, 256, 128):
        if plane_elems % cand == 0:
            return cand
    return 512


def _pick_tile_rows(rows_per_plane, lane_width, budget_bytes=2 << 20):
    """Row-strip height: a multiple of 32 (u8 sublane packing; also covers the
    f32 outputs) or the full plane when it is small.  Targets ~2 strips per
    plane (=> ~6 total grid steps with the channel axis) with a per-step
    footprint (2x u8 in + 2 x 2x f32 out, double-buffered ~= 18 B/elem) well
    below every chip's scoped VMEM limit, v7x's 32 MiB included."""
    sub = 32
    if rows_per_plane <= sub:
        return rows_per_plane
    t = -(-rows_per_plane // 2)          # aim for ~2 strips per plane
    t = -(-t // sub) * sub               # round up to a multiple of 32
    while t > sub and 18 * t * lane_width > budget_bytes:
        t -= sub
    return min(t, rows_per_plane)


def _patchify_planar(x, patch_size, stride, n):
    """x: (C, H, W) float32 -> (n*n, C, P, P). Pure layout glue (XLA-side);
    the innermost (W) axis stays contiguous through every step."""
    C, H, W = x.shape
    P = patch_size
    if stride == patch_size:
        x = x[:, : n * P, : n * P].reshape(C, n, P, n, P)
        return jnp.transpose(x, (1, 3, 0, 2, 4)).reshape(n * n, C, P, P)
    # Overlapping stride: small windowed gather of rows then columns.
    starts = jnp.arange(n) * stride
    idx = starts[:, None] + jnp.arange(P)[None, :]   # (n, P)
    x = x[:, idx, :]        # (C, n, P, W)
    x = x[:, :, :, idx]     # (C, n, P, n, P)
    return jnp.transpose(x, (1, 3, 0, 2, 4)).reshape(n * n, C, P, P)


@functools.partial(jax.jit, static_argnames=("img_size", "patch_size", "stride"))
def extract_patches(im, *, img_size, patch_size, stride=None):
    """im: (img_size, img_size, 3) HWC image, ideally uint8 (values 0..255).

    Returns (batch1, batch2), each (n*n, 3, patch_size, patch_size) float32.
    """
    if stride is None:
        stride = patch_size
    H, W, C = im.shape
    assert (H, W) == (img_size, img_size), "input must already be img_size"
    assert C == 3, "module hardcodes 3 channels (mean/std are 3-channel)"
    # TODO(synk): torchvision T.Resize (PIL bilinear resample) is not
    # re-implemented; the input is assumed to already be img_size x img_size.
    # Note: if (img_size - patch_size) % stride != 0 trailing rows/cols are
    # dropped, matching the reference module.

    n = (img_size - patch_size) // stride + 1

    # --- channel de-interleave + lane-dense planar view (uint8 side) --------
    plane = H * W
    L = _pick_lane_width(plane)
    plane_pad = -(-plane // L) * L
    x_pl = jnp.transpose(im, (2, 0, 1)).reshape(C, plane)
    if plane_pad != plane:
        x_pl = jnp.pad(x_pl, ((0, 0), (0, plane_pad - plane)))
    rows = plane_pad // L
    x_pl = x_pl.reshape(C, rows, L)

    # Per-channel scale / bias for transform2, passed as SMEM kernel inputs
    # (not closure constants).
    a = jnp.asarray([1.0 / (255.0 * s) for s in _STD], dtype=jnp.float32)
    b = jnp.asarray([-m / s for m, s in zip(_MEAN, _STD)], dtype=jnp.float32)

    tile_rows = _pick_tile_rows(rows, L)
    grid = (C, pl.cdiv(rows, tile_rows))

    data_spec = pl.BlockSpec((1, tile_rows, L), lambda c, s: (c, s, 0))
    smem_spec = pl.BlockSpec(memory_space=pltpu.MemorySpace.SMEM)
    out_struct = jax.ShapeDtypeStruct((C, rows, L), jnp.float32)

    o1, o2 = pl.pallas_call(
        _normalize_kernel,
        out_shape=(out_struct, out_struct),
        grid=grid,
        in_specs=[smem_spec, smem_spec, data_spec],
        out_specs=(data_spec, data_spec),
        compiler_params=pltpu.CompilerParams(
            dimension_semantics=("parallel", "parallel")),
    )(a, b, x_pl)

    def unflatten(o):
        o = o.reshape(C, plane_pad)
        if plane_pad != plane:
            o = o[:, :plane]
        return o.reshape(C, H, W)

    # Patch extraction + NCHW: outputs are already channel-planar, so this is
    # a reshape + one transpose (or a small gather for overlapping strides).
    batch1 = _patchify_planar(unflatten(o1), patch_size, stride, n)
    batch2 = _patchify_planar(unflatten(o2), patch_size, stride, n)
    return batch1, batch2


def _reference(im_f32, img_size, patch_size, stride):
    """Plain-JAX reference matching the PyTorch module semantics."""
    n = (img_size - patch_size) // stride + 1
    patches = []
    for i in range(n):
        for j in range(n):
            p = im_f32[i * stride:i * stride + patch_size,
                       j * stride:j * stride + patch_size, :]
            patches.append(p)
    patches = jnp.stack(patches)                       # (N, P, P, C)
    b1 = jnp.transpose(patches / 255.0, (0, 3, 1, 2))  # (N, C, P, P)
    mean = jnp.asarray(_MEAN).reshape(1, 3, 1, 1)
    std = jnp.asarray(_STD).reshape(1, 3, 1, 1)
    b2 = (b1 - mean) / std
    return b1, b2


if __name__ == "__main__":
    key = jax.random.PRNGKey(0)

    def make_image(sz, k):
        u8 = jax.random.randint(k, (sz, sz, 3), 0, 256, dtype=jnp.int32)
        u8 = u8.astype(jnp.uint8)
        return u8, u8.astype(jnp.float32)

    # 1) Default stride == patch_size (16px image -> 2x2 = 4 patches).
    img_size, patch_size = 16, 8
    im_u8, im_f32 = make_image(img_size, key)
    b1, b2 = extract_patches(im_u8, img_size=img_size, patch_size=patch_size)
    jax.block_until_ready((b1, b2))
    assert b1.shape == (4, 3, 8, 8) and b1.dtype == jnp.float32
    assert b2.shape == (4, 3, 8, 8) and b2.dtype == jnp.float32
    r1, r2 = _reference(im_f32, img_size, patch_size, patch_size)
    assert jnp.allclose(b1, r1, atol=1e-6)
    assert jnp.allclose(b2, r2, atol=1e-5)

    # 2) Overlapping stride (stride=4 -> 3x3 = 9 patches).
    ob1, ob2 = extract_patches(im_u8, img_size=img_size, patch_size=patch_size,
                               stride=4)
    jax.block_until_ready((ob1, ob2))
    assert ob1.shape == (9, 3, 8, 8) and ob2.shape == (9, 3, 8, 8)
    or1, or2 = _reference(im_f32, img_size, patch_size, 4)
    assert jnp.allclose(ob1, or1, atol=1e-6)
    assert jnp.allclose(ob2, or2, atol=1e-5)

    # 3) Size that exercises the lane-padding path (20*20=400 not a multiple
    #    of 128) with an overlapping stride (4x4 = 16 patches).
    key2 = jax.random.PRNGKey(1)
    pm_u8, pm_f32 = make_image(20, key2)
    pb1, pb2 = extract_patches(pm_u8, img_size=20, patch_size=8, stride=4)
    jax.block_until_ready((pb1, pb2))
    assert pb1.shape == (16, 3, 8, 8) and pb2.shape == (16, 3, 8, 8)
    pr1, pr2 = _reference(pm_f32, 20, 8, 4)
    assert jnp.allclose(pb1, pr1, atol=1e-6)
    assert jnp.allclose(pb2, pr2, atol=1e-5)

    print("KERNEL_OK")
</pallas_src>

<mosaic_0001>
module attributes {stable_mosaic.version = 11 : i64} {
  func.func @_normalize_kernel(%arg0: i32, %arg1: i32, %arg2: memref<3xf32, #tpu.memory_space<smem>>, %arg3: memref<3xf32, #tpu.memory_space<smem>>, %arg4: memref<1x1x256xi8, #tpu.memory_space<vmem>>, %arg5: memref<1x1x256xf32, #tpu.memory_space<vmem>>, %arg6: memref<1x1x256xf32, #tpu.memory_space<vmem>>) attributes {dimension_semantics = [#tpu.dimension_semantics<parallel>, #tpu.dimension_semantics<parallel>], iteration_bounds = array<i64: 3, 1>, scalar_prefetch = 0 : i64, scratch_operands = 0 : i64, tpu.core_type = #tpu.core_type<tc>, window_params = [{transform_indices = @transform_0, window_bounds = array<i64: 3>}, {transform_indices = @transform_1, window_bounds = array<i64: 3>}, {transform_indices = @transform_2, window_bounds = array<i64: 1, 1, 256>}, {transform_indices = @transform_3, window_bounds = array<i64: 1, 1, 256>}, {transform_indices = @transform_4, window_bounds = array<i64: 1, 1, 256>}]} {
    %c0 = arith.constant 0 : index
    %c0_0 = arith.constant 0 : index
    %c0_1 = arith.constant 0 : index
    %0 = vector.load %arg4[%c0, %c0_0, %c0_1] : memref<1x1x256xi8, #tpu.memory_space<vmem>>, vector<1x1x256xi8>
    %1 = arith.uitofp %0 : vector<1x1x256xi8> to vector<1x1x256xf32>
    %cst = arith.constant 0.00392156886 : f32
    %2 = vector.broadcast %cst : f32 to vector<1x1x256xf32>
    %3 = arith.mulf %1, %2 : vector<1x1x256xf32>
    %c0_2 = arith.constant 0 : index
    %c0_3 = arith.constant 0 : index
    %c0_4 = arith.constant 0 : index
    %4 = vector.load %arg5[%c0_2, %c0_3, %c0_4] : memref<1x1x256xf32, #tpu.memory_space<vmem>>, vector<1x1x256xf32>
    tpu.vector_store %arg5[%c0_2, %c0_3, %c0_4], %3 {strides = array<i32>} : memref<1x1x256xf32, #tpu.memory_space<vmem>>, vector<1x1x256xf32>,
    %5 = arith.index_cast %arg0 : i32 to index
    %6 = memref.load %arg2[%5] : memref<3xf32, #tpu.memory_space<smem>>
    %7 = vector.broadcast %6 : f32 to vector<1x1x256xf32>
    %8 = arith.mulf %1, %7 : vector<1x1x256xf32>
    %9 = arith.index_cast %arg0 : i32 to index
    %10 = memref.load %arg3[%9] : memref<3xf32, #tpu.memory_space<smem>>
    %11 = vector.broadcast %10 : f32 to vector<1x1x256xf32>
    %12 = arith.addf %8, %11 : vector<1x1x256xf32>
    %c0_5 = arith.constant 0 : index
    %c0_6 = arith.constant 0 : index
    %c0_7 = arith.constant 0 : index
    %13 = vector.load %arg6[%c0_5, %c0_6, %c0_7] : memref<1x1x256xf32, #tpu.memory_space<vmem>>, vector<1x1x256xf32>
    tpu.vector_store %arg6[%c0_5, %c0_6, %c0_7], %12 {strides = array<i32>} : memref<1x1x256xf32, #tpu.memory_space<vmem>>, vector<1x1x256xf32>,
    return
  }
  func.func @transform_0(%arg0: i32, %arg1: i32) -> i32 {
    %c0_i32 = arith.constant 0 : i32
    %c0_i32_0 = arith.constant 0 : i32
    return %c0_i32 : i32
  }
  func.func @transform_1(%arg0: i32, %arg1: i32) -> i32 {
    %c0_i32 = arith.constant 0 : i32
    %c0_i32_0 = arith.constant 0 : i32
    return %c0_i32 : i32
  }
  func.func @transform_2(%arg0: i32, %arg1: i32) -> (i32, i32, i32) {
    %c0_i32 = arith.constant 0 : i32
    %c0_i32_0 = arith.constant 0 : i32
    return %arg0, %arg1, %c0_i32 : i32, i32, i32
  }
  func.func @transform_3(%arg0: i32, %arg1: i32) -> (i32, i32, i32) {
    %c0_i32 = arith.constant 0 : i32
    %c0_i32_0 = arith.constant 0 : i32
    return %arg0, %arg1, %c0_i32 : i32, i32, i32
  }
  func.func @transform_4(%arg0: i32, %arg1: i32) -> (i32, i32, i32) {
    %c0_i32 = arith.constant 0 : i32
    %c0_i32_0 = arith.constant 0 : i32
    return %arg0, %arg1, %c0_i32 : i32, i32, i32
  }
}

</mosaic_0001>

<bundles_post_ra>
// kernel: extract_patches.1
= control target key start
LH: loop header
LB: loop body
LE: loop exit
PB: predicated region body
PF: predicated region fallthrough
CT: control target
= control target key end

     0   :  { %10 = vsyncpa [#allocation3], 0  ;;  %s710_s0 = inlined_call_operand.vmem [shape: f32[3], index: 0, kind: input, shape index: {}]   ;;  %s711_s1 = inlined_call_operand.vmem [shape: f32[3], index: 1, kind: input, shape index: {}]   ;;  %s712_s2 = inlined_call_operand.vmem [shape: u8[3,1,256], index: 2, kind: input, shape index: {}]   ;;  %s713_s3 = inlined_call_operand.vmem [shape: f32[3,1,256], index: 3, kind: output, shape index: {0}]   ;;  %s714_s4 = inlined_call_operand.vmem [shape: f32[3,1,256], index: 4, kind: output, shape index: {1}]  }
   0x1   :  { %11 = vsyncpa [#allocation5], 0  ;;  %s629_s15 = smov 0   ;;  %s631_s16 = smov 0  }
   0x2   :  { %s633_s17 = smov 0  }
   0x3 LB: > { %s479_s18 = sadd.s32 4294967295, %s599_s17   ;;  %s29_s19 = sadd.s32 1, %s595_s16  ;;  %s599_s17 = sphi %s633_s17, %s17_s17   ;;  %s595_s16 = sphi %s631_s16, %s724_s16   ;;  %s591_s15 = sphi %s629_s15, %s723_s15  }
   0x4   : > { %p31_p0 = scmp.ge.s32.totalorder %s29_s19, 3  ;;  %p481_p1 = scmp.ge.s32.totalorder %s599_s17, 1 }
   0x5   : > { %p160_p2 = scmp.lt.s32.totalorder %s599_s17, 4  ;;  %p654_p4 = scmp.eq.s32.totalorder %s479_s18, 0 }
   0x6   : > { %s726_s19 = smov (%p31_p0, %s29_s19), 0  ;;  %s173_s24 = sshll.u32 %s710_s0, 4  ;;  %s174_s24 = int_to_ptr.vmem [resolvable:$true] %s173_s24 }
   0x7   : > { %p650_p3 = pnand %p481_p1, %p160_p2  ;;  %s184_s27 = sshll.u32 %s711_s1, 4  ;;  %s185_s27 = int_to_ptr.vmem [resolvable:$true] %s184_s27 }
   0x8   : > { %s719_s21 = scalar_select %p654_p4, 1, 0 }
   0x9   : > { %s718_s20 = scalar_select %p650_p3, 1, 0 }
   0xa   : > { %p501_p5 = pneg %p650_p3  ;;  %s539_s29 = scalar_lea.vmem %s174_s24, 16 }
   0xb   : > { %p540_p7 = scmp.ne.s32.totalorder %s174_s24, %s539_s29  ;;  %p547_p11 = scmp.lt.s32.totalorder %s174_s24, %s174_s24 }
   0xc   : > { %p668_p6 = pnand %p654_p4, %p501_p5  ;;  %p548_p12 = scmp.lt.s32.totalorder %s539_s29, %s539_s29 }
   0xe   : > { %p541_p8 = pneg %p668_p6  ;;  %p549_p13 = por %p548_p12, %p547_p11 }
  0x10   : > { %p542_p9 = pnand %p541_p8, %p540_p7 }
  0x12   : > { %p543_p10 = pneg %p542_p9 }
  0x14   : > { %p550_p0 = pnand %p549_p13, %p543_p10 }
  0x16   : > { %553 = shalt.err (!%p550_p0)
}
  0x17   : > { %s601_s30 = smov [#allocation2]   ;;  %s554_s5 = scalar_lea.vmem %s185_s27, 16 }
  0x18   : > { %504 = dma.vmem_to_smem (!%p668_p6), %s174_s24, 16, %s601_s30, [#allocation3]  }
  0x19   : > { %p555_p1 = scmp.ne.s32.totalorder %s185_s27, %s554_s5  ;;  %p562_p4 = scmp.lt.s32.totalorder %s185_s27, %s185_s27 }
  0x1a   : > { %p563_p3 = scmp.lt.s32.totalorder %s554_s5, %s554_s5 }
  0x1b   : > { %p557_p2 = pnand %p555_p1, %p541_p8 }
  0x1c   : > { %p564_p7 = por %p563_p3, %p562_p4 }
  0x1d   : > { %p558_p5 = pneg %p557_p2 }
  0x1f   : > { %p565_p9 = pnand %p564_p7, %p558_p5 }
  0x21   : > { %568 = shalt.err (!%p565_p9)
}
  0x22   : > { %s602_s6 = smov [#allocation4]   ;;  %p721_p10 = scmp.ne.s32.totalorder %s718_s20, 0 }
  0x23   : > { %507 = dma.vmem_to_smem (!%p668_p6), %s185_s27, 16, %s602_s6, [#allocation5]  }
  0x24   : > { %208 = sbr.rel (%p721_p10) target bundleno = 70 (0x46), region = 32  ;;  %p722_p11 = scmp.ne.s32.totalorder (!%p721_p10), %s719_s21, 0 }
  0x2b   : > { %582 = dma.done.wait (%p722_p11), [#allocation3], 16  }
  0x2c   : > { %584 = vsyncadd (%p722_p11), [#allocation3], 4294967280 }
  0x2d   : > { %586 = dma.done.wait (%p722_p11), [#allocation5], 16  }
  0x2e   : > { %588 = vsyncadd (%p722_p11), [#allocation5], 4294967280 }
  0x2f   : > { %218 = sfence }
  0x30   : > { %p253_p3 = scmp.lt.s32.totalorder %s591_s15, 2  ;;  %s303_s7 = sld [smem:[#allocation2 + %s591_s15]]  ;;  %v603_v0 = vmov 1966171168   ;;  %v286_v2 = vlaneseq }
  0x31   : > { %v284_v1 = vunpack.c.l.s4 %v603_v0  ;;  %s306_s10 = sld [smem:[#allocation4 + %s591_s15]] }
  0x32   : > { %s254_s8 = scalar_select %p253_p3, %s591_s15, 2  ;;  %v287_v6 = vshrl.u32 %v286_v2, 7  ;;  %vm300_vm0 = vcmp.lt.s32.totalorder %v286_v2, 256 }
  0x33   : > { %v285_v5 = vunpack.c.0.s8 %v284_v1 }
  0x34   : > { %s488_s9 = sshll.u32 %s254_s8, 1 }
  0x35   : > { %s260_s13 = scalar_lea.vmem %s712_s2, %s488_s9  ;;  %v288_v10 = vsub.s32 %v285_v5, %v287_v6  ;;  %s268_s15 = scalar_lea.vmem %s713_s3, %s488_s9 }
  0x36   : > { %v277_v3 = vld [vmem:[%s260_s13] sm:$0x3]  ;;  %v304_v8 = vstv %s303_s7  ;;  %s276_s22 = scalar_lea.vmem %s714_s4, %s488_s9 }
  0x37   : > { %v278_v4 = vunpack.c.0.s8 %v277_v3  ;;  %v307_v11 = vstv %s306_s10 }
  0x39   : > { %v279_v7 = vand.u32 255, %v278_v4 }
  0x3b   : > { %v280_v9 = vcvt.s32.f32 %v279_v7 }
  0x3d   : > { %v281_v12 = vmul.f32 0.003921569, %v280_v9  ;;  %v305_v13 = vmul.f32 %v304_v8, %v280_v9 }
  0x3f   : > { %v289_v14 = vrot.slane %v281_v12, %v288_v10  ;;  %v308_v15 = vadd.f32 %v307_v11, %v305_v13 }
  0x41   : > { %v296_v16 = vrot.slane %v289_v14, %v288_v10  ;;  %v316_v17 = vrot.slane %v308_v15, %v288_v10 }
  0x43   : > { %302 = vst.msk [vmem:[%s268_s15] sm:$0x3] %vm300_vm0, %v296_v16  ;;  %v323_v18 = vrot.slane %v316_v17, %v288_v10 }
  0x45   : > { %325 = vst.msk [vmem:[%s276_s22] sm:$0x3] %vm300_vm0, %v323_v18 }
  0x46 PF: > { %s17_s17 = sadd.s32 1, %s599_s17   ;;  %s723_s15 = smov %s595_s16 }
  0x47   : > { %p14_p4 = scmp.ge.s32.totalorder %s17_s17, 5   ;;  %s724_s16 = smov %s726_s19 }
  0x49   :  { %16 = sbr.rel (!%p14_p4) target bundleno = 3 (0x3), region = 83 }
  0x50   :  { %375 = vsyncpa [#allocation3], 1 }
  0x51   :  { %377 = vsyncpa [#allocation3 + $0x1], 1 }
  0x52   :  { %378 = vsyncpa [#allocation5], 1 }

</bundles_post_ra>
